<compile_context>
chip_gen: v6e
topology: v6e:2x2x1
jax: 0.10.0
libtpu: 0.0.40
codegen_flags: <defaults>
</compile_context>

<pallas_src>
import jax
import jax.numpy as jnp
from jax import lax
from jax.experimental import pallas as pl
from jax.experimental.pallas import tpu as pltpu

LANE = 128                 # lane width; all channel dims are zero-padded to this
COUNT_LANE = LANE - 1      # spare output lane used to accumulate the in-degree count


def _round_up(x, m):
    return ((x + m - 1) // m) * m


def _fused_hgt_kernel(x_ref, wx_ref, we_ref, b_ref, src_ref, dst_ref, ea_ref,
                      out_ref, h_ref, acc_ref):
    """One (layer, edge-tile) step of the fused 2-layer model.

    x_ref   : (N, 128)      f32  padded input node features (resident)
    wx_ref  : (1, 128, 128) f32  this layer's node-feature weights, zero-padded
    we_ref  : (1, 1, 128)   f32  this layer's edge-attribute weight row, zero-padded
    b_ref   : (1, 1, 128)   f32  this layer's bias, zero-padded
    src_ref : (TE, 1)       i32  source node index per edge (sublane-major)
    dst_ref : (1, TE)       i32  destination node index per edge (lane-major)
    ea_ref  : (TE, 1)       f32  edge attribute per edge
    out_ref : (N, 128)      f32  final output (written once, at the very last step)
    h_ref   : (N, 128)      f32  scratch: H = input @ W_x + b for the current layer
    acc_ref : (N, 128)      f32  scratch: scatter-sum accumulator / layer output
    """
    l = pl.program_id(0)                       # layer phase: 0 or 1
    t = pl.program_id(1)                       # edge tile
    last = t == pl.num_programs(1) - 1

    n = x_ref.shape[0]
    te = ea_ref.shape[0]

    # ---- per-layer init: H = input @ W_x + b, zero the accumulator ----
    @pl.when((t == 0) & (l == 0))
    def _init_layer0():
        h_ref[...] = jnp.dot(x_ref[...], wx_ref[0],
                             preferred_element_type=jnp.float32) + b_ref[0]
        acc_ref[...] = jnp.zeros_like(acc_ref)

    @pl.when((t == 0) & (l == 1))
    def _init_layer1():
        # layer-1's finalized output is still resident in acc_ref
        h_ref[...] = jnp.dot(acc_ref[...], wx_ref[0],
                             preferred_element_type=jnp.float32) + b_ref[0]
        acc_ref[...] = jnp.zeros_like(acc_ref)

    # ---- gather: one-hot(src) @ H -> (TE, 128); sentinel src == n gives a zero row ----
    ids_en = lax.broadcasted_iota(jnp.int32, (te, n), 1)                 # (TE, N)
    onehot_src = jnp.where(src_ref[...] == ids_en, 1.0, 0.0)             # (TE, N) f32
    h_src = jnp.dot(onehot_src, h_ref[...], preferred_element_type=jnp.float32)

    # ---- per-edge message: relu(H[src] + edge_attr * w_edge); plant 1.0 in the count lane
    msg = jnp.maximum(h_src + ea_ref[...] * we_ref[0], 0.0)              # (TE, 128)
    lane_ids = lax.broadcasted_iota(jnp.int32, (te, LANE), 1)
    msg = jnp.where(lane_ids == COUNT_LANE, 1.0, msg)                    # in-degree rider

    # ---- scatter-add: pre-transposed one-hot(dst) (N, TE) @ msg (TE, 128) ----
    node_ids_ne = lax.broadcasted_iota(jnp.int32, (n, te), 0)            # (N, TE)
    onehot_dst_t = jnp.where(dst_ref[...] == node_ids_ne, 1.0, 0.0)      # (N, TE) f32
    acc_ref[...] += jnp.dot(onehot_dst_t, msg, preferred_element_type=jnp.float32)

    # ---- finalize: mean over in-edges + the model forward's outer relu ----
    @pl.when(last)
    def _finalize():
        acc = acc_ref[...]
        cnt = acc[:, COUNT_LANE:COUNT_LANE + 1]                          # (N, 1) in-degree
        inv = pl.reciprocal(jnp.maximum(cnt, 1.0))                       # exact reciprocal
        acc_ref[...] = jnp.maximum(acc * inv, 0.0)

    @pl.when(last & (l == 1))
    def _store():
        out_ref[...] = acc_ref[...]


def custom_hgt_model(x, edge_index, edge_attr, params, *, max_edge_tile=512):
    """Forward pass of CustomHGTModel: relu(layer2(relu(layer1(x)))), fully fused."""
    n_nodes = x.shape[0]
    c_in = params["w1"].shape[0] - 1
    hid = params["w1"].shape[1]
    c_out = params["w2"].shape[1]
    assert x.shape[1] == c_in and params["w2"].shape[0] == hid + 1
    # lane COUNT_LANE is reserved for the in-degree count -> all channel dims must fit below it
    assert c_in <= LANE and hid < LANE and c_out < LANE

    src = edge_index[0].astype(jnp.int32)
    dst = edge_index[1].astype(jnp.int32)
    n_edges = src.shape[0]

    # zero-pad node features to the 128-lane width shared by both layers
    x_p = jnp.zeros((n_nodes, LANE), jnp.float32).at[:, :c_in].set(x.astype(jnp.float32))

    # stacked, zero-padded per-layer weights (each layer consumes a (N, 128) input)
    wx = jnp.zeros((2, LANE, LANE), jnp.float32)
    wx = wx.at[0, :c_in, :hid].set(params["w1"][:c_in].astype(jnp.float32))
    wx = wx.at[1, :hid, :c_out].set(params["w2"][:hid].astype(jnp.float32))
    we = jnp.zeros((2, 1, LANE), jnp.float32)
    we = we.at[0, 0, :hid].set(params["w1"][c_in].astype(jnp.float32))
    we = we.at[1, 0, :c_out].set(params["w2"][hid].astype(jnp.float32))
    b = jnp.zeros((2, 1, LANE), jnp.float32)
    b = b.at[0, 0, :hid].set(params["b1"].reshape(-1).astype(jnp.float32))
    b = b.at[1, 0, :c_out].set(params["b2"].reshape(-1).astype(jnp.float32))

    # pad edges to a lane-aligned tile multiple; sentinel dst == n_nodes drops padded edges
    # (also handles n_edges == 0 cleanly)
    e_min = max(_round_up(n_edges, 128), 128)
    edge_tile = min(max_edge_tile, e_min)          # multiple of 128 (or the full padded E)
    e_pad = _round_up(e_min, edge_tile)
    pad = e_pad - n_edges
    src_p = jnp.pad(src, (0, pad), constant_values=n_nodes)[:, None]        # (E_pad, 1)
    dst_p = jnp.pad(dst, (0, pad), constant_values=n_nodes)[None, :]        # (1, E_pad) lane-major
    ea_p = jnp.pad(edge_attr.astype(jnp.float32), (0, pad))[:, None]        # (E_pad, 1)

    n_tiles = e_pad // edge_tile
    out = pl.pallas_call(
        _fused_hgt_kernel,
        out_shape=jax.ShapeDtypeStruct((n_nodes, LANE), jnp.float32),
        grid=(2, n_tiles),                                          # (layer, edge tile)
        in_specs=[
            pl.BlockSpec((n_nodes, LANE), lambda l, t: (0, 0)),     # x          (resident)
            pl.BlockSpec((1, LANE, LANE), lambda l, t: (l, 0, 0)),  # W_x        (per layer)
            pl.BlockSpec((1, 1, LANE), lambda l, t: (l, 0, 0)),     # w_edge     (per layer)
            pl.BlockSpec((1, 1, LANE), lambda l, t: (l, 0, 0)),     # bias       (per layer)
            pl.BlockSpec((edge_tile, 1), lambda l, t: (t, 0)),      # src tile   (sublane-major)
            pl.BlockSpec((1, edge_tile), lambda l, t: (0, t)),      # dst tile   (lane-major)
            pl.BlockSpec((edge_tile, 1), lambda l, t: (t, 0)),      # edge_attr tile
        ],
        out_specs=pl.BlockSpec((n_nodes, LANE), lambda l, t: (0, 0)),   # written once at the end
        scratch_shapes=[
            pltpu.VMEM((n_nodes, LANE), jnp.float32),               # H  (current layer)
            pltpu.VMEM((n_nodes, LANE), jnp.float32),               # accumulator / layer output
        ],
        compiler_params=pltpu.CompilerParams(
            dimension_semantics=("arbitrary", "arbitrary")),
    )(x_p, wx, we, b, src_p, dst_p, ea_p)

    return out[:, :c_out]


# ---------- deterministic parameter init (PyTorch nn.Linear-style uniform) ----------
def _linear_init(key, fan_in, fan_out):
    k1, k2 = jax.random.split(key)
    bound = 1.0 / jnp.sqrt(jnp.float32(fan_in))
    w = jax.random.uniform(k1, (fan_in, fan_out), jnp.float32, -bound, bound)
    b = jax.random.uniform(k2, (1, fan_out), jnp.float32, -bound, bound)
    return w, b


# ---------- pure-JAX reference (mirrors the PyTorch module) ----------
def _ref_layer(x, src, dst, ea, w, b):
    n = x.shape[0]
    xe = jnp.concatenate([x[src], ea[:, None]], axis=-1)
    msg = jax.nn.relu(xe @ w + b)
    summ = jnp.zeros((n, w.shape[1]), jnp.float32).at[dst].add(msg)
    cnt = jnp.zeros((n,), jnp.float32).at[dst].add(1.0)
    return jax.nn.relu(summ / jnp.maximum(cnt, 1.0)[:, None])


if __name__ == "__main__":
    # small shapes consistent with the module
    N = 16            # num nodes
    E = 64            # num edges
    IN_CH = 8
    HID_CH = 16
    OUT_CH = 8
    NUM_NODE_TYPES = 4

    key = jax.random.PRNGKey(0)
    kx, ke, ka, kw1, kw2, kemb = jax.random.split(key, 6)

    x = jax.random.normal(kx, (N, IN_CH), jnp.float32)
    edge_index = jax.random.randint(ke, (2, E), 0, N, jnp.int32)
    edge_attr = jax.random.normal(ka, (E,), jnp.float32)

    w1, b1 = _linear_init(kw1, IN_CH + 1, HID_CH)
    w2, b2 = _linear_init(kw2, HID_CH + 1, OUT_CH)
    # node_type_embedding exists in the module but is never used in its forward
    node_type_embedding = jax.random.normal(kemb, (NUM_NODE_TYPES, HID_CH), jnp.float32)
    params = {"w1": w1, "b1": b1, "w2": w2, "b2": b2}

    out = jax.block_until_ready(custom_hgt_model(x, edge_index, edge_attr, params))

    # correctness check vs pure-JAX reference
    src, dst = edge_index[0], edge_index[1]
    ref = _ref_layer(_ref_layer(x, src, dst, edge_attr, w1, b1), src, dst, edge_attr, w2, b2)
    assert out.shape == (N, OUT_CH)
    assert jnp.allclose(out, ref, rtol=1e-5, atol=1e-5), "mismatch vs reference"

    print("KERNEL_OK")
</pallas_src>

<mosaic_0001>
module attributes {stable_mosaic.version = 11 : i64} {
  func.func @_fused_hgt_kernel(%arg0: i32, %arg1: i32, %arg2: memref<16x128xf32, #tpu.memory_space<vmem>>, %arg3: memref<1x128x128xf32, #tpu.memory_space<vmem>>, %arg4: memref<1x1x128xf32, #tpu.memory_space<vmem>>, %arg5: memref<1x1x128xf32, #tpu.memory_space<vmem>>, %arg6: memref<128x1xi32, #tpu.memory_space<vmem>>, %arg7: memref<1x128xi32, #tpu.memory_space<vmem>>, %arg8: memref<128x1xf32, #tpu.memory_space<vmem>>, %arg9: memref<16x128xf32, #tpu.memory_space<vmem>>, %arg10: memref<16x128xf32, #tpu.memory_space<vmem>>, %arg11: memref<16x128xf32, #tpu.memory_space<vmem>>) attributes {dimension_semantics = [#tpu.dimension_semantics<arbitrary>, #tpu.dimension_semantics<arbitrary>], iteration_bounds = array<i64: 2, 1>, scalar_prefetch = 0 : i64, scratch_operands = 2 : i64, tpu.core_type = #tpu.core_type<tc>, window_params = [{pipeline_mode = #tpu.pipeline_mode<synchronous>, transform_indices = @transform_0, window_bounds = array<i64: 16, 128>}, {transform_indices = @transform_1, window_bounds = array<i64: 1, 128, 128>}, {transform_indices = @transform_2, window_bounds = array<i64: 1, 1, 128>}, {transform_indices = @transform_3, window_bounds = array<i64: 1, 1, 128>}, {transform_indices = @transform_4, window_bounds = array<i64: 128, 1>}, {transform_indices = @transform_5, window_bounds = array<i64: 1, 128>}, {transform_indices = @transform_6, window_bounds = array<i64: 128, 1>}, {pipeline_mode = #tpu.pipeline_mode<synchronous>, transform_indices = @transform_7, window_bounds = array<i64: 16, 128>}]} {
    %c0_i32 = arith.constant 0 : i32
    %0 = arith.cmpi eq, %arg1, %c0_i32 : i32
    %c0_i32_0 = arith.constant 0 : i32
    %1 = arith.cmpi eq, %arg1, %c0_i32_0 : i32
    %c0_i32_1 = arith.constant 0 : i32
    %2 = arith.cmpi eq, %arg0, %c0_i32_1 : i32
    %3 = arith.andi %1, %2 : i1
    %4 = arith.extui %3 : i1 to i32
    %c0_i32_2 = arith.constant 0 : i32
    %5 = arith.cmpi ne, %4, %c0_i32_2 : i32
    scf.if %5 {
      %c0_29 = arith.constant 0 : index
      %c0_30 = arith.constant 0 : index
      %51 = vector.load %arg2[%c0_29, %c0_30] : memref<16x128xf32, #tpu.memory_space<vmem>>, vector<16x128xf32>
      %c0_31 = arith.constant 0 : index
      %c0_32 = arith.constant 0 : index
      %c0_33 = arith.constant 0 : index
      %52 = vector.load %arg3[%c0_31, %c0_32, %c0_33] : memref<1x128x128xf32, #tpu.memory_space<vmem>>, vector<1x128x128xf32>
      %53 = vector.shape_cast %52 : vector<1x128x128xf32> to vector<128x128xf32>
      %cst_34 = arith.constant dense<0.000000e+00> : vector<16x128xf32>
      %54 = tpu.matmul %51, %53, %cst_34 {dimension_numbers = #tpu.dot_dimension_numbers<[1], [0], [0], [1], [0, 0, 1, 1], [], []>} : vector<16x128xf32>, vector<128x128xf32>, vector<16x128xf32> -> vector<16x128xf32>
      %c0_35 = arith.constant 0 : index
      %c0_36 = arith.constant 0 : index
      %c0_37 = arith.constant 0 : index
      %55 = vector.load %arg5[%c0_35, %c0_36, %c0_37] : memref<1x1x128xf32, #tpu.memory_space<vmem>>, vector<1x1x128xf32>
      %56 = vector.shape_cast %55 : vector<1x1x128xf32> to vector<1x128xf32>
      %57 = vector.broadcast %56 : vector<1x128xf32> to vector<16x128xf32>
      %58 = arith.addf %54, %57 : vector<16x128xf32>
      %c0_38 = arith.constant 0 : index
      %c0_39 = arith.constant 0 : index
      %59 = vector.load %arg10[%c0_38, %c0_39] : memref<16x128xf32, #tpu.memory_space<vmem>>, vector<16x128xf32>
      tpu.vector_store %arg10[%c0_38, %c0_39], %58 {strides = array<i32>} : memref<16x128xf32, #tpu.memory_space<vmem>>, vector<16x128xf32>,
      %cst_40 = arith.constant 0.000000e+00 : f32
      %60 = vector.broadcast %cst_40 : f32 to vector<16x128xf32>
      %c0_41 = arith.constant 0 : index
      %c0_42 = arith.constant 0 : index
      %61 = vector.load %arg11[%c0_41, %c0_42] : memref<16x128xf32, #tpu.memory_space<vmem>>, vector<16x128xf32>
      tpu.vector_store %arg11[%c0_41, %c0_42], %60 {strides = array<i32>} : memref<16x128xf32, #tpu.memory_space<vmem>>, vector<16x128xf32>,
    } else {
    }
    %c0_i32_3 = arith.constant 0 : i32
    %6 = arith.cmpi eq, %arg1, %c0_i32_3 : i32
    %c1_i32 = arith.constant 1 : i32
    %7 = arith.cmpi eq, %arg0, %c1_i32 : i32
    %8 = arith.andi %6, %7 : i1
    %9 = arith.extui %8 : i1 to i32
    %c0_i32_4 = arith.constant 0 : i32
    %10 = arith.cmpi ne, %9, %c0_i32_4 : i32
    scf.if %10 {
      %c0_29 = arith.constant 0 : index
      %c0_30 = arith.constant 0 : index
      %51 = vector.load %arg11[%c0_29, %c0_30] : memref<16x128xf32, #tpu.memory_space<vmem>>, vector<16x128xf32>
      %c0_31 = arith.constant 0 : index
      %c0_32 = arith.constant 0 : index
      %c0_33 = arith.constant 0 : index
      %52 = vector.load %arg3[%c0_31, %c0_32, %c0_33] : memref<1x128x128xf32, #tpu.memory_space<vmem>>, vector<1x128x128xf32>
      %53 = vector.shape_cast %52 : vector<1x128x128xf32> to vector<128x128xf32>
      %cst_34 = arith.constant dense<0.000000e+00> : vector<16x128xf32>
      %54 = tpu.matmul %51, %53, %cst_34 {dimension_numbers = #tpu.dot_dimension_numbers<[1], [0], [0], [1], [0, 0, 1, 1], [], []>} : vector<16x128xf32>, vector<128x128xf32>, vector<16x128xf32> -> vector<16x128xf32>
      %c0_35 = arith.constant 0 : index
      %c0_36 = arith.constant 0 : index
      %c0_37 = arith.constant 0 : index
      %55 = vector.load %arg5[%c0_35, %c0_36, %c0_37] : memref<1x1x128xf32, #tpu.memory_space<vmem>>, vector<1x1x128xf32>
      %56 = vector.shape_cast %55 : vector<1x1x128xf32> to vector<1x128xf32>
      %57 = vector.broadcast %56 : vector<1x128xf32> to vector<16x128xf32>
      %58 = arith.addf %54, %57 : vector<16x128xf32>
      %c0_38 = arith.constant 0 : index
      %c0_39 = arith.constant 0 : index
      %59 = vector.load %arg10[%c0_38, %c0_39] : memref<16x128xf32, #tpu.memory_space<vmem>>, vector<16x128xf32>
      tpu.vector_store %arg10[%c0_38, %c0_39], %58 {strides = array<i32>} : memref<16x128xf32, #tpu.memory_space<vmem>>, vector<16x128xf32>,
      %cst_40 = arith.constant 0.000000e+00 : f32
      %60 = vector.broadcast %cst_40 : f32 to vector<16x128xf32>
      %c0_41 = arith.constant 0 : index
      %c0_42 = arith.constant 0 : index
      %61 = vector.load %arg11[%c0_41, %c0_42] : memref<16x128xf32, #tpu.memory_space<vmem>>, vector<16x128xf32>
      tpu.vector_store %arg11[%c0_41, %c0_42], %60 {strides = array<i32>} : memref<16x128xf32, #tpu.memory_space<vmem>>, vector<16x128xf32>,
    } else {
    }
    %11 = tpu.iota {dimensions = array<i32: 1>} : vector<128x16xi32>
    %c0 = arith.constant 0 : index
    %c0_5 = arith.constant 0 : index
    %12 = vector.load %arg6[%c0, %c0_5] : memref<128x1xi32, #tpu.memory_space<vmem>>, vector<128x1xi32>
    %13 = vector.broadcast %12 : vector<128x1xi32> to vector<128x16xi32>
    %14 = arith.cmpi eq, %13, %11 : vector<128x16xi32>
    %cst = arith.constant 1.000000e+00 : f32
    %cst_6 = arith.constant 0.000000e+00 : f32
    %15 = vector.broadcast %cst : f32 to vector<128x16xf32>
    %16 = vector.broadcast %cst_6 : f32 to vector<128x16xf32>
    %17 = arith.select %14, %15, %16 : vector<128x16xi1>, vector<128x16xf32>
    %c0_7 = arith.constant 0 : index
    %c0_8 = arith.constant 0 : index
    %18 = vector.load %arg10[%c0_7, %c0_8] : memref<16x128xf32, #tpu.memory_space<vmem>>, vector<16x128xf32>
    %cst_9 = arith.constant dense<0.000000e+00> : vector<128x128xf32>
    %19 = tpu.matmul %17, %18, %cst_9 {dimension_numbers = #tpu.dot_dimension_numbers<[1], [0], [0], [1], [0, 0, 1, 1], [], []>} : vector<128x16xf32>, vector<16x128xf32>, vector<128x128xf32> -> vector<128x128xf32>
    %c0_10 = arith.constant 0 : index
    %c0_11 = arith.constant 0 : index
    %20 = vector.load %arg8[%c0_10, %c0_11] : memref<128x1xf32, #tpu.memory_space<vmem>>, vector<128x1xf32>
    %c0_12 = arith.constant 0 : index
    %c0_13 = arith.constant 0 : index
    %c0_14 = arith.constant 0 : index
    %21 = vector.load %arg4[%c0_12, %c0_13, %c0_14] : memref<1x1x128xf32, #tpu.memory_space<vmem>>, vector<1x1x128xf32>
    %22 = vector.shape_cast %21 : vector<1x1x128xf32> to vector<1x128xf32>
    %23 = vector.broadcast %20 : vector<128x1xf32> to vector<128x128xf32>
    %24 = vector.broadcast %22 : vector<1x128xf32> to vector<128x128xf32>
    %25 = arith.mulf %23, %24 : vector<128x128xf32>
    %26 = arith.addf %19, %25 : vector<128x128xf32>
    %cst_15 = arith.constant 0.000000e+00 : f32
    %27 = vector.broadcast %cst_15 : f32 to vector<128x128xf32>
    %28 = arith.maximumf %26, %27 : vector<128x128xf32>
    %29 = tpu.iota {dimensions = array<i32: 1>} : vector<128x128xi32>
    %c127_i32 = arith.constant 127 : i32
    %30 = vector.broadcast %c127_i32 : i32 to vector<128x128xi32>
    %31 = arith.cmpi eq, %29, %30 : vector<128x128xi32>
    %cst_16 = arith.constant 1.000000e+00 : f32
    %32 = vector.broadcast %cst_16 : f32 to vector<128x128xf32>
    %33 = arith.select %31, %32, %28 : vector<128x128xi1>, vector<128x128xf32>
    %34 = tpu.iota {dimensions = array<i32: 0>} : vector<16x128xi32>
    %c0_17 = arith.constant 0 : index
    %c0_18 = arith.constant 0 : index
    %35 = vector.load %arg7[%c0_17, %c0_18] : memref<1x128xi32, #tpu.memory_space<vmem>>, vector<1x128xi32>
    %36 = vector.broadcast %35 : vector<1x128xi32> to vector<16x128xi32>
    %37 = arith.cmpi eq, %36, %34 : vector<16x128xi32>
    %cst_19 = arith.constant 1.000000e+00 : f32
    %cst_20 = arith.constant 0.000000e+00 : f32
    %38 = vector.broadcast %cst_19 : f32 to vector<16x128xf32>
    %39 = vector.broadcast %cst_20 : f32 to vector<16x128xf32>
    %40 = arith.select %37, %38, %39 : vector<16x128xi1>, vector<16x128xf32>
    %c0_21 = arith.constant 0 : index
    %c0_22 = arith.constant 0 : index
    %41 = vector.load %arg11[%c0_21, %c0_22] : memref<16x128xf32, #tpu.memory_space<vmem>>, vector<16x128xf32>
    %cst_23 = arith.constant dense<0.000000e+00> : vector<16x128xf32>
    %42 = tpu.matmul %40, %33, %cst_23 {dimension_numbers = #tpu.dot_dimension_numbers<[1], [0], [0], [1], [0, 0, 1, 1], [], []>} : vector<16x128xf32>, vector<128x128xf32>, vector<16x128xf32> -> vector<16x128xf32>
    %43 = arith.addf %41, %42 : vector<16x128xf32>
    %c0_24 = arith.constant 0 : index
    %c0_25 = arith.constant 0 : index
    %44 = vector.load %arg11[%c0_24, %c0_25] : memref<16x128xf32, #tpu.memory_space<vmem>>, vector<16x128xf32>
    tpu.vector_store %arg11[%c0_24, %c0_25], %43 {strides = array<i32>} : memref<16x128xf32, #tpu.memory_space<vmem>>, vector<16x128xf32>,
    %45 = arith.extui %0 : i1 to i32
    %c0_i32_26 = arith.constant 0 : i32
    %46 = arith.cmpi ne, %45, %c0_i32_26 : i32
    scf.if %46 {
      %c0_29 = arith.constant 0 : index
      %c0_30 = arith.constant 0 : index
      %51 = vector.load %arg11[%c0_29, %c0_30] : memref<16x128xf32, #tpu.memory_space<vmem>>, vector<16x128xf32>
      %52 = vector.extract_strided_slice %51 {offsets = [0, 127], sizes = [16, 1], strides = [1, 1]} : vector<16x128xf32> to vector<16x1xf32>
      %cst_31 = arith.constant 1.000000e+00 : f32
      %53 = vector.broadcast %cst_31 : f32 to vector<16x1xf32>
      %54 = arith.maximumf %52, %53 : vector<16x1xf32>
      %55 = tpu.reciprocal %54 : vector<16x1xf32> -> vector<16x1xf32>
      %56 = vector.broadcast %55 : vector<16x1xf32> to vector<16x128xf32>
      %57 = arith.mulf %51, %56 : vector<16x128xf32>
      %cst_32 = arith.constant 0.000000e+00 : f32
      %58 = vector.broadcast %cst_32 : f32 to vector<16x128xf32>
      %59 = arith.maximumf %57, %58 : vector<16x128xf32>
      %c0_33 = arith.constant 0 : index
      %c0_34 = arith.constant 0 : index
      %60 = vector.load %arg11[%c0_33, %c0_34] : memref<16x128xf32, #tpu.memory_space<vmem>>, vector<16x128xf32>
      tpu.vector_store %arg11[%c0_33, %c0_34], %59 {strides = array<i32>} : memref<16x128xf32, #tpu.memory_space<vmem>>, vector<16x128xf32>,
    } else {
    }
    %c1_i32_27 = arith.constant 1 : i32
    %47 = arith.cmpi eq, %arg0, %c1_i32_27 : i32
    %48 = arith.andi %0, %47 : i1
    %49 = arith.extui %48 : i1 to i32
    %c0_i32_28 = arith.constant 0 : i32
    %50 = arith.cmpi ne, %49, %c0_i32_28 : i32
    scf.if %50 {
      %c0_29 = arith.constant 0 : index
      %c0_30 = arith.constant 0 : index
      %51 = vector.load %arg11[%c0_29, %c0_30] : memref<16x128xf32, #tpu.memory_space<vmem>>, vector<16x128xf32>
      %c0_31 = arith.constant 0 : index
      %c0_32 = arith.constant 0 : index
      %52 = vector.load %arg9[%c0_31, %c0_32] : memref<16x128xf32, #tpu.memory_space<vmem>>, vector<16x128xf32>
      tpu.vector_store %arg9[%c0_31, %c0_32], %51 {strides = array<i32>} : memref<16x128xf32, #tpu.memory_space<vmem>>, vector<16x128xf32>,
    } else {
    }
    return
  }
  func.func @transform_0(%arg0: i32, %arg1: i32) -> (i32, i32) {
    %c0_i32 = arith.constant 0 : i32
    %c0_i32_0 = arith.constant 0 : i32
    %c0_i32_1 = arith.constant 0 : i32
    return %c0_i32, %c0_i32_0 : i32, i32
  }
  func.func @transform_1(%arg0: i32, %arg1: i32) -> (i32, i32, i32) {
    %c0_i32 = arith.constant 0 : i32
    %c0_i32_0 = arith.constant 0 : i32
    %c0_i32_1 = arith.constant 0 : i32
    return %arg0, %c0_i32, %c0_i32_0 : i32, i32, i32
  }
  func.func @transform_2(%arg0: i32, %arg1: i32) -> (i32, i32, i32) {
    %c0_i32 = arith.constant 0 : i32
    %c0_i32_0 = arith.constant 0 : i32
    %c0_i32_1 = arith.constant 0 : i32
    return %arg0, %c0_i32, %c0_i32_0 : i32, i32, i32
  }
  func.func @transform_3(%arg0: i32, %arg1: i32) -> (i32, i32, i32) {
    %c0_i32 = arith.constant 0 : i32
    %c0_i32_0 = arith.constant 0 : i32
    %c0_i32_1 = arith.constant 0 : i32
    return %arg0, %c0_i32, %c0_i32_0 : i32, i32, i32
  }
  func.func @transform_4(%arg0: i32, %arg1: i32) -> (i32, i32) {
    %c0_i32 = arith.constant 0 : i32
    %c0_i32_0 = arith.constant 0 : i32
    return %arg1, %c0_i32 : i32, i32
  }
  func.func @transform_5(%arg0: i32, %arg1: i32) -> (i32, i32) {
    %c0_i32 = arith.constant 0 : i32
    %c0_i32_0 = arith.constant 0 : i32
    return %c0_i32, %arg1 : i32, i32
  }
  func.func @transform_6(%arg0: i32, %arg1: i32) -> (i32, i32) {
    %c0_i32 = arith.constant 0 : i32
    %c0_i32_0 = arith.constant 0 : i32
    return %arg1, %c0_i32 : i32, i32
  }
  func.func @transform_7(%arg0: i32, %arg1: i32) -> (i32, i32) {
    %c0_i32 = arith.constant 0 : i32
    %c0_i32_0 = arith.constant 0 : i32
    %c0_i32_1 = arith.constant 0 : i32
    return %c0_i32, %c0_i32_0 : i32, i32
  }
}

</mosaic_0001>

<bundles_post_ra>
// kernel: tpu_custom_call.1
= control target key start
LH: loop header
LB: loop body
LE: loop exit
PB: predicated region body
PF: predicated region fallthrough
CT: control target
= control target key end

     0   :  { %12 = vsyncpa [#allocation5], 0  ;;  %s2088_s0 = inlined_call_operand.hbm [shape: f32[16,128], index: 0, kind: input, shape index: {}]   ;;  %s2089_s1 = inlined_call_operand.vmem [shape: f32[2,128,128], index: 1, kind: input, shape index: {}]   ;;  %s2090_s2 = inlined_call_operand.vmem [shape: f32[2,1,128], index: 2, kind: input, shape index: {}]   ;;  %s2091_s3 = inlined_call_operand.vmem [shape: f32[2,1,128], index: 3, kind: input, shape index: {}]   ;;  %s2092_s4 = inlined_call_operand.vmem [shape: s32[128,1], index: 4, kind: input, shape index: {}]   ;;  %s2093_s5 = inlined_call_operand.vmem [shape: s32[1,128], index: 5, kind: input, shape index: {}]   ;;  %s2094_s6 = inlined_call_operand.vmem [shape: f32[128,1], index: 6, kind: input, shape index: {}]   ;;  %s2095_s7 = inlined_call_operand.hbm [shape: f32[16,128], index: 7, kind: output, shape index: {}]  }
   0x1   :  { %13 = vsyncpa [#allocation6], 0  ;;  %s1737_s24 = smov 0   ;;  %s1739_s25 = smov 0  }
   0x2   :  { %s1741_s26 = smov 0  }
   0x3 LB: > { %s1296_s27 = sadd.s32 4294967295, %s1683_s26   ;;  %s31_s28 = sadd.s32 1, %s1679_s25  ;;  %s1683_s26 = sphi %s1741_s26, %s19_s26   ;;  %s1679_s25 = sphi %s1739_s25, %s2100_s25   ;;  %s1675_s24 = sphi %s1737_s24, %s2099_s24  }
   0x4   : > { %p33_p0 = scmp.ge.s32.totalorder %s31_s28, 2  ;;  %p1297_p1 = scmp.ge.s32.totalorder %s1683_s26, 1 }
   0x5   : > { %p234_p2 = scmp.lt.s32.totalorder %s1683_s26, 3  ;;  %p1764_p4 = scmp.eq.s32.totalorder %s1296_s27, 0 }
   0x6   : > { %s2102_s28 = smov (%p33_p0, %s31_s28), 0  ;;  %s1685_s8 = smov [#allocation4]  }
   0x7   : > { %p1758_p3 = pnand %p1297_p1, %p234_p2  ;;  %s246_s9 = sshll.u32 %s1685_s8, 4  ;;  %s247_s9 = int_to_ptr.vmem [resolvable:$true] %s246_s9 }
   0x8   : > { %s1614_s10 = scalar_lea.vmem %s247_s9, 256  ;;  %p1622_p11 = scmp.lt.s32.totalorder %s247_s9, %s247_s9 }
   0x9   : > { %p1551_p5 = pneg %p1758_p3  ;;  %p1615_p8 = scmp.ne.s32.totalorder %s247_s9, %s1614_s10 }
   0xa   : > { %p1623_p12 = scmp.lt.s32.totalorder %s1614_s10, %s1614_s10 }
   0xb   : > { %p1552_p6 = pnand %p1764_p4, %p1551_p5 }
   0xc   : > { %p1624_p13 = por %p1623_p12, %p1622_p11 }
   0xd   : > { %p1605_p7 = pneg %p1552_p6 }
   0xf   : > { %p1617_p9 = pnand %p1615_p8, %p1605_p7 }
  0x11   : > { %p1618_p10 = pneg %p1617_p9 }
  0x13   : > { %p1625_p0 = pnand %p1624_p13, %p1618_p10 }
  0x15   : > { %1628 = shalt.err (!%p1625_p0)
}
  0x16   : > { %s1686_s11 = smov 128   ;;  %s1687_s12 = smov 8  }
  0x17   : > { %1554 = dma.hbm_to_vmem [thread:$0]  (!%p1552_p6), %s2088_s0, 256, %s247_s9, [#allocation5], %s1686_s11, %s1686_s11, %s1687_s12  }
  0x18   : > { %306 = sbr.rel (%p1758_p3) target bundleno = 1255 (0x4e7), region = 48 }
  0x1d   : > { %1666 = dma.done.wait (%p1764_p4), [#allocation5], 256  }
  0x1e   : > { %1668 = vsyncadd (%p1764_p4), [#allocation5], 4294967040  ;;  %p352_p1 = scmp.lt.s32.totalorder %s1675_s24, 1  ;;  %p379_p2 = scmp.eq.s32.totalorder %s1675_s24, 0 }
  0x1f   : > { %v384_v4 = vld [vmem:[#allocation4] sm:$0xff] (%p379_p2)  ;;  %v385_v17 = vld [vmem:[#allocation4 + $0x8] sm:$0xff] (%p379_p2)  ;;  %v1688_v18 = vmov (%p379_p2), 0.0  }
  0x20   : > { %s1784_s15 = scalar_select %p352_p1, %s1675_s24, 1  ;;  %1442 = vmatprep.mubr.f32.mxu0 (%p379_p2), %v384_v4  ;;  %486 = vst [vmem:[#allocation3 + $0x8] sm:$0xff] (%p379_p2), %v1688_v18  ;;  %487 = vst [vmem:[#allocation3] sm:$0xff] (%p379_p2), %v1688_v18 }
  0x21   : > { %383 = sbr.rel (!%p379_p2) target bundleno = 267 (0x10b), region = 56 }
  0x22   : > { %s1335_s16 = sshll.u32 %s1784_s15, 7  ;;  %s359_s19 = scalar_lea.vmem %s2090_s2, %s1784_s15 }
  0x23   : > { %s1794_s22 = scalar_lea.vmem %s2089_s1, %s1335_s16  ;;  %s1800_s30 = scalar_lea.vmem %s2091_s3, %s1784_s15 }
  0x24   : > { %v401_v0 = vld [vmem:[%s1794_s22 + $0x78] sm:$0xff] (%p379_p2)  ;;  %v400_v1 = vld [vmem:[%s1794_s22 + $0x70] sm:$0xff] (%p379_p2)  ;;  %v399_v2 = vld [vmem:[%s1794_s22 + $0x68] sm:$0xff] (%p379_p2) }
  0x25   : > { %1410 = vmatprep.subr.mxu0 (%p379_p2), %v401_v0  ;;  %v398_v3 = vld [vmem:[%s1794_s22 + $0x60] sm:$0xff] (%p379_p2)  ;;  %v397_v5 = vld [vmem:[%s1794_s22 + $0x58] sm:$0xff] (%p379_p2)  ;;  %v396_v6 = vld [vmem:[%s1794_s22 + $0x50] sm:$0xff] (%p379_p2) }
  0x26   : > { %1411 = vmatpush3.msra.mxu0 %v401_v0  ;;  %v395_v7 = vld [vmem:[%s1794_s22 + $0x48] sm:$0xff]  ;;  %v394_v8 = vld [vmem:[%s1794_s22 + $0x40] sm:$0xff]  ;;  %v393_v9 = vld [vmem:[%s1794_s22 + $0x38] sm:$0xff] }
  0x27   : > { %1412 = vmatprep.subr.mxu0 %v400_v1  ;;  %v392_v10 = vld [vmem:[%s1794_s22 + $0x30] sm:$0xff]  ;;  %v391_v11 = vld [vmem:[%s1794_s22 + $0x28] sm:$0xff]  ;;  %v390_v12 = vld [vmem:[%s1794_s22 + $0x20] sm:$0xff] }
  0x28   : > { %1413 = vmatpush3.msra.mxu0 %v400_v1  ;;  %v389_v13 = vld [vmem:[%s1794_s22 + $0x18] sm:$0xff]  ;;  %v388_v14 = vld [vmem:[%s1794_s22 + $0x10] sm:$0xff]  ;;  %v387_v15 = vld [vmem:[%s1794_s22 + $0x8] sm:$0xff] }
  0x29   : > { %1414 = vmatprep.subr.mxu0 %v399_v2  ;;  %v386_v16 = vld [vmem:[%s1794_s22] sm:$0xff] }
  0x2a   : > { %1415 = vmatpush3.msra.mxu0 %v399_v2  ;;  %v1308_v19 = vld [vmem:[%s1800_s30] ss:$0 sm:$0xff] }
  0x2b   : > { %1416 = vmatprep.subr.mxu0 %v398_v3 }
  0x2c   : > { %1417 = vmatpush3.msra.mxu0 %v398_v3 }
  0x2d   : > { %1418 = vmatprep.subr.mxu0 %v397_v5 }
  0x2e   : > { %1419 = vmatpush3.msra.mxu0 %v397_v5 }
  0x2f   : > { %1420 = vmatprep.subr.mxu0 %v396_v6 }
  0x30   : > { %1421 = vmatpush3.msra.mxu0 %v396_v6 }
  0x31   : > { %1422 = vmatprep.subr.mxu0 %v395_v7 }
  0x32   : > { %1423 = vmatpush3.msra.mxu0 %v395_v7 }
  0x33   : > { %1424 = vmatprep.subr.mxu0 %v394_v8 }
  0x34   : > { %1425 = vmatpush3.msra.mxu0 %v394_v8 }
  0x35   : > { %1426 = vmatprep.subr.mxu0 %v393_v9 }
  0x36   : > { %1427 = vmatpush3.msra.mxu0 %v393_v9 }
  0x37   : > { %1428 = vmatprep.subr.mxu0 %v392_v10 }
  0x38   : > { %1429 = vmatpush3.msra.mxu0 %v392_v10 }
  0x39   : > { %1430 = vmatprep.subr.mxu0 %v391_v11 }
  0x3a   : > { %1431 = vmatpush3.msra.mxu0 %v391_v11 }
  0x3b   : > { %1432 = vmatprep.subr.mxu0 %v390_v12 }
  0x3c   : > { %1433 = vmatpush3.msra.mxu0 %v390_v12 }
  0x3d   : > { %1434 = vmatprep.subr.mxu0 %v389_v13 }
  0x3e   : > { %1435 = vmatpush3.msra.mxu0 %v389_v13 }
  0x3f   : > { %1436 = vmatprep.subr.mxu0 %v388_v14 }
  0x40   : > { %1437 = vmatpush3.msra.mxu0 %v388_v14 }
  0x41   : > { %1438 = vmatprep.subr.mxu0 %v387_v15 }
  0x42   : > { %1439 = vmatpush3.msra.mxu0 %v387_v15 }
  0x43   : > { %1440 = vmatprep.subr.mxu0 %v386_v16 }
  0x44   : > { %1441 = vmatpush3.msra.mxu0 %v386_v16 }
  0x45   : > { %1443 = vmatmul.mubr.f32.vlgmr.msra.gmra.mxu0 %v385_v17 }
 0x105   : > { %v1444_v20 = vpop.f32.mrf.mxu0 }
 0x106   : > { %v481_v21 = vadd.f32 %v1444_v20, %v1308_v19 }
 0x107   : > { %v475_v22 = vpop.f32.mrf.mxu0 }
 0x108   : > { %485 = vst [vmem:[#allocation2 + $0x8] sm:$0xff] %v481_v21  ;;  %v476_v23 = vadd.f32 %v1308_v19, %v475_v22 }
 0x10a   : > { %484 = vst [vmem:[#allocation2] sm:$0xff] %v476_v23 }
 0x10b PF: > { %p488_p3 = scmp.eq.s32.totalorder %s1675_s24, 1 }
 0x10c   : > { %v510_v24 = vld [vmem:[%s1794_s22 + $0x78] sm:$0xff] (%p488_p3)  ;;  %v509_v25 = vld [vmem:[%s1794_s22 + $0x70] sm:$0xff] (%p488_p3)  ;;  %v508_v26 = vld [vmem:[%s1794_s22 + $0x68] sm:$0xff] (%p488_p3)  ;;  %v1689_v31 = vmov (%p488_p3), 0.0  }
 0x10d   : > { %492 = sbr.rel (!%p488_p3) target bundleno = 499 (0x1f3), region = 60  ;;  %1445 = vmatprep.subr.mxu0 (%p488_p3), %v510_v24  ;;  %v507_v27 = vld [vmem:[%s1794_s22 + $0x60] sm:$0xff] (%p488_p3)  ;;  %v493_v28 = vld [vmem:[#allocation3 + $0x8] sm:$0xff] (%p488_p3)  ;;  %v494_v29 = vld [vmem:[#allocation3] sm:$0xff] (%p488_p3) }
 0x10e   : > { %1446 = vmatpush3.msra.mxu0 (%p488_p3), %v510_v24  ;;  %v506_v30 = vld [vmem:[%s1794_s22 + $0x58] sm:$0xff] (%p488_p3)  ;;  %1477 = vmatprep.mubr.f32.mxu0 (%p488_p3), %v493_v28  ;;  %595 = vst [vmem:[#allocation3 + $0x8] sm:$0xff] (%p488_p3), %v1689_v31  ;;  %596 = vst [vmem:[#allocation3] sm:$0xff] (%p488_p3), %v1689_v31  ;;  %v505_v32 = vld [vmem:[%s1794_s22 + $0x50] sm:$0xff] (%p488_p3) }
 0x10f   : > { %1447 = vmatprep.subr.mxu0 (%p488_p3), %v509_v25  ;;  %v504_v33 = vld [vmem:[%s1794_s22 + $0x48] sm:$0xff] (%p488_p3)  ;;  %v503_v34 = vld [vmem:[%s1794_s22 + $0x40] sm:$0xff] (%p488_p3)  ;;  %v502_v35 = vld [vmem:[%s1794_s22 + $0x38] sm:$0xff] (%p488_p3) }
 0x110   : > { %1448 = vmatpush3.msra.mxu0 (%p488_p3), %v509_v25  ;;  %v501_v36 = vld [vmem:[%s1794_s22 + $0x30] sm:$0xff] (%p488_p3)  ;;  %v500_v37 = vld [vmem:[%s1794_s22 + $0x28] sm:$0xff] (%p488_p3)  ;;  %v499_v38 = vld [vmem:[%s1794_s22 + $0x20] sm:$0xff] (%p488_p3) }
 0x111   : > { %1449 = vmatprep.subr.mxu0 (%p488_p3), %v508_v26  ;;  %v498_v39 = vld [vmem:[%s1794_s22 + $0x18] sm:$0xff] (%p488_p3)  ;;  %v497_v40 = vld [vmem:[%s1794_s22 + $0x10] sm:$0xff] (%p488_p3)  ;;  %v496_v41 = vld [vmem:[%s1794_s22 + $0x8] sm:$0xff] (%p488_p3) }
 0x112   : > { %1450 = vmatpush3.msra.mxu0 %v508_v26  ;;  %v495_v42 = vld [vmem:[%s1794_s22] sm:$0xff] }
 0x113   : > { %1451 = vmatprep.subr.mxu0 %v507_v27  ;;  %v1310_v43 = vld [vmem:[%s1800_s30] ss:$0 sm:$0xff] }
 0x114   : > { %1452 = vmatpush3.msra.mxu0 %v507_v27 }
 0x115   : > { %1453 = vmatprep.subr.mxu0 %v506_v30 }
 0x116   : > { %1454 = vmatpush3.msra.mxu0 %v506_v30 }
 0x117   : > { %1455 = vmatprep.subr.mxu0 %v505_v32 }
 0x118   : > { %1456 = vmatpush3.msra.mxu0 %v505_v32 }
 0x119   : > { %1457 = vmatprep.subr.mxu0 %v504_v33 }
 0x11a   : > { %1458 = vmatpush3.msra.mxu0 %v504_v33 }
 0x11b   : > { %1459 = vmatprep.subr.mxu0 %v503_v34 }
 0x11c   : > { %1460 = vmatpush3.msra.mxu0 %v503_v34 }
 0x11d   : > { %1461 = vmatprep.subr.mxu0 %v502_v35 }
 0x11e   : > { %1462 = vmatpush3.msra.mxu0 %v502_v35 }
 0x11f   : > { %1463 = vmatprep.subr.mxu0 %v501_v36 }
 0x120   : > { %1464 = vmatpush3.msra.mxu0 %v501_v36 }
 0x121   : > { %1465 = vmatprep.subr.mxu0 %v500_v37 }
 0x122   : > { %1466 = vmatpush3.msra.mxu0 %v500_v37 }
 0x123   : > { %1467 = vmatprep.subr.mxu0 %v499_v38 }
 0x124   : > { %1468 = vmatpush3.msra.mxu0 %v499_v38 }
 0x125   : > { %1469 = vmatprep.subr.mxu0 %v498_v39 }
 0x126   : > { %1470 = vmatpush3.msra.mxu0 %v498_v39 }
 0x127   : > { %1471 = vmatprep.subr.mxu0 %v497_v40 }
 0x128   : > { %1472 = vmatpush3.msra.mxu0 %v497_v40 }
 0x129   : > { %1473 = vmatprep.subr.mxu0 %v496_v41 }
 0x12a   : > { %1474 = vmatpush3.msra.mxu0 %v496_v41 }
 0x12b   : > { %1475 = vmatprep.subr.mxu0 %v495_v42 }
 0x12c   : > { %1476 = vmatpush3.msra.mxu0 %v495_v42 }
 0x12d   : > { %1478 = vmatmul.mubr.f32.vlgmr.msra.gmra.mxu0 %v494_v29 }
 0x1ed   : > { %v1479_v44 = vpop.f32.mrf.mxu0 }
 0x1ee   : > { %v590_v45 = vadd.f32 %v1479_v44, %v1310_v43 }
 0x1ef   : > { %v584_v46 = vpop.f32.mrf.mxu0 }
 0x1f0   : > { %594 = vst [vmem:[#allocation2 + $0x8] sm:$0xff] %v590_v45  ;;  %v585_v47 = vadd.f32 %v1310_v43, %v584_v46 }
 0x1f2   : > { %593 = vst [vmem:[#allocation2] sm:$0xff] %v585_v47 }
 0x1f3 PF: > { %v601_v48 = vld [vmem:[%s2092_s4 + $0x10] sm:$0xff]  ;;  %v599_v49 = vld [vmem:[%s2092_s4] sm:$0xff]  ;;  %v1690_v50 = vmov 0   ;;  %v602_v51 = vld [vmem:[%s2092_s4 + $0x18] sm:$0xff]  ;;  %v597_v19 = vlaneseq  ;;  %vm816_vm0 = vcmask 130048   ;;  %v1691_v23 = vmov 0.0  }
 0x1f4   : > { %1596 = vset.pattern.permute.xlu1 %v1690_v50  ;;  %1595 = vset.pattern.permute.xlu0 %v1690_v50  ;;  %v600_v52 = vld [vmem:[%s2092_s4 + $0x8] sm:$0xff]  ;;  %v603_v54 = vld [vmem:[%s2092_s4 + $0x20] sm:$0xff]  ;;  %v606_v56 = vld [vmem:[%s2092_s4 + $0x38] sm:$0xff] }
 0x1f5   : > { %622 = vperm.xlu1 %1596, %v601_v48   ;;  %616 = vperm.xlu0 %1595, %v599_v49   ;;  %v604_v53 = vld [vmem:[%s2092_s4 + $0x28] sm:$0xff]  ;;  %v605_v57 = vld [vmem:[%s2092_s4 + $0x30] sm:$0xff]  ;;  %v607_v60 = vld [vmem:[%s2092_s4 + $0x40] sm:$0xff]  ;;  %v1936_v20 = vand.u32 127, %v597_v19 }
 0x1f6   : > { %v608_v59 = vld [vmem:[%s2092_s4 + $0x48] sm:$0xff]  ;;  %v610_v61 = vld [vmem:[%s2092_s4 + $0x58] sm:$0xff]  ;;  %v609_v62 = vld [vmem:[%s2092_s4 + $0x50] sm:$0xff] }
 0x1f7   : > { %v696_v55 = vld [vmem:[#allocation2 + $0x8] sm:$0xff]  ;;  %v611_v0 = vld [vmem:[%s2092_s4 + $0x60] sm:$0xff]  ;;  %v614_v1 = vld [vmem:[%s2092_s4 + $0x78] sm:$0xff] }
 0x1f8   : > { %1480 = vmatprep.subr.mxu0 %v696_v55  ;;  %v612_v63 = vld [vmem:[%s2092_s4 + $0x68] sm:$0xff]  ;;  %v613_v2 = vld [vmem:[%s2092_s4 + $0x70] sm:$0xff]  ;;  %v712_v4 = vld [vmem:[%s2094_s6 + $0x78] sm:$0xff] }
 0x1f9   : > { %625 = vperm.xlu1 %1596, %v602_v51   ;;  %619 = vperm.xlu0 %1595, %v600_v52   ;;  %v695_v58 = vld [vmem:[#allocation2] sm:$0xff]  ;;  %v711_v3 = vld [vmem:[%s2094_s6 + $0x70] sm:$0xff]  ;;  %v710_v6 = vld [vmem:[%s2094_s6 + $0x68] sm:$0xff] }
 0x1fa   : > { %1481 = vmatpush3.msra.mxu0 %v696_v55  ;;  %v709_v5 = vld [vmem:[%s2094_s6 + $0x60] sm:$0xff]  ;;  %v707_v7 = vld [vmem:[%s2094_s6 + $0x50] sm:$0xff]  ;;  %v708_v8 = vld [vmem:[%s2094_s6 + $0x58] sm:$0xff] }
 0x1fb   : > { %1482 = vmatprep.subr.mxu0 %v695_v58  ;;  %v705_v9 = vld [vmem:[%s2094_s6 + $0x40] sm:$0xff]  ;;  %v706_v10 = vld [vmem:[%s2094_s6 + $0x48] sm:$0xff]  ;;  %v703_v11 = vld [vmem:[%s2094_s6 + $0x30] sm:$0xff] }
 0x1fc   : > { %1483 = vmatpush3.msra.mxu0 %v695_v58  ;;  %v704_v12 = vld [vmem:[%s2094_s6 + $0x38] sm:$0xff]  ;;  %v701_v13 = vld [vmem:[%s2094_s6 + $0x20] sm:$0xff]  ;;  %v702_v14 = vld [vmem:[%s2094_s6 + $0x28] sm:$0xff] }
 0x1fd   : > { %631 = vperm.xlu1 %1596, %v604_v53   ;;  %628 = vperm.xlu0 %1595, %v603_v54   ;;  %v699_v15 = vld [vmem:[%s2094_s6 + $0x10] sm:$0xff]  ;;  %v700_v16 = vld [vmem:[%s2094_s6 + $0x18] sm:$0xff]  ;;  %v697_v17 = vld [vmem:[%s2094_s6] sm:$0xff]  ;;  %v1044_v54 = vshrl.u32 %v597_v19, 7 }
 0x1fe   : > { %v698_v18 = vld [vmem:[%s2094_s6 + $0x8] sm:$0xff] }
 0x1ff   : > { %v1971_v55 = vadd.s32 8, %v1044_v54 }
 0x201   : > { %637 = vperm.xlu1 %1596, %v606_v56   ;;  %634 = vperm.xlu0 %1595, %v605_v57   ;;  %v1976_v56 = vld [vmem:[%s2093_s5] ss:$0 sm:$0xff]  ;;  %v1692_v57 = vmov 1.0  }
 0x205   : > { %643 = vperm.xlu1 %1596, %v608_v59   ;;  %640 = vperm.xlu0 %1595, %v607_v60  }
 0x209   : > { %649 = vperm.xlu1 %1596, %v610_v61   ;;  %646 = vperm.xlu0 %1595, %v609_v62  }
 0x20d   : > { %655 = vperm.xlu1 %1596, %v612_v63   ;;  %652 = vperm.xlu0 %1595, %v611_v0  }
 0x211   : > { %661 = vperm.xlu1 %1596, %v614_v1   ;;  %658 = vperm.xlu0 %1595, %v613_v2  }
 0x215   : > { %786 = vperm.xlu1 %1596, %v711_v3   ;;  %791 = vperm.xlu0 %1595, %v712_v4  }
 0x219   : > { %776 = vperm.xlu1 %1596, %v709_v5   ;;  %781 = vperm.xlu0 %1595, %v710_v6  }
 0x21d   : > { %766 = vperm.xlu1 %1596, %v707_v7   ;;  %771 = vperm.xlu0 %1595, %v708_v8  }
 0x221   : > { %756 = vperm.xlu1 %1596, %v705_v9   ;;  %761 = vperm.xlu0 %1595, %v706_v10  }
 0x225   : > { %746 = vperm.xlu1 %1596, %v703_v11   ;;  %751 = vperm.xlu0 %1595, %v704_v12   ;;  %v1999_v12 = vld [vmem:[%s359_s19] ss:$0 sm:$0xff] }
 0x229   : > { %736 = vperm.xlu1 %1596, %v701_v13   ;;  %741 = vperm.xlu0 %1595, %v702_v14  }
 0x22d   : > { %726 = vperm.xlu1 %1596, %v699_v15   ;;  %731 = vperm.xlu0 %1595, %v700_v16  }
 0x231   : > { %716 = vperm.xlu1 %1596, %v697_v17   ;;  %721 = vperm.xlu0 %1595, %v698_v18  }
 0x270   : > { %v623_v21 = vpop.permute.xlu1 %622  ;;  %v617_v22 = vpop.permute.xlu0 %616 }
 0x271   : > { %vm663_vm1 = vcmp.eq.s32.totalorder %v617_v22, %v1936_v20  ;;  %vm665_vm2 = vcmp.eq.s32.totalorder %v623_v21, %v1936_v20 }
 0x272   : > { %v679_v24 = vsel %vm663_vm1, 1.0, %v1691_v23  ;;  %v681_v27 = vsel %vm665_vm2, 1.0, %v1691_v23  ;;  %vm1051_vm2 = vcmp.eq.s32.totalorder %v1976_v56, %v1044_v54 }
 0x273   : > { %1484 = vmatprep.mubr.msk.f32.mxu0 %vm816_vm0, %v679_v24  ;;  %1540 = vmatprep.mubr.msk.f32.mxu1 %vm1051_vm2, %v1692_v57 }
 0x274   : > { %v626_v25 = vpop.permute.xlu1 %625  ;;  %v620_v26 = vpop.permute.xlu0 %619 }
 0x275   : > { %vm664_vm3 = vcmp.eq.s32.totalorder %v620_v26, %v1936_v20  ;;  %vm666_vm4 = vcmp.eq.s32.totalorder %v626_v25, %v1936_v20 }
 0x276   : > { %v680_v28 = vsel %vm664_vm3, 1.0, %v1691_v23  ;;  %v682_v31 = vsel %vm666_vm4, 1.0, %v1691_v23  ;;  %vm1052_vm3 = vcmp.eq.s32.totalorder %v1976_v56, %v1971_v55 }
 0x277   : > { %1485 = vmatmul.mubr.msk.f32.vlgmr.msra.gmra.mxu0 %vm816_vm0, %v680_v28 }
 0x278   : > { %v632_v29 = vpop.permute.xlu1 %631  ;;  %v629_v30 = vpop.permute.xlu0 %628  ;;  %1487 = vmatprep.mubr.msk.f32.mxu0 %vm816_vm0, %v681_v27 }
 0x279   : > { %vm667_vm5 = vcmp.eq.s32.totalorder %v629_v30, %v1936_v20  ;;  %vm668_vm6 = vcmp.eq.s32.totalorder %v632_v29, %v1936_v20 }
 0x27a   : > { %v683_v32 = vsel %vm667_vm5, 1.0, %v1691_v23  ;;  %v684_v35 = vsel %vm668_vm6, 1.0, %v1691_v23 }
 0x27b   : > { %1488 = vmatmul.mubr.msk.f32.gmra.mxu0 %vm816_vm0, %v682_v31 }
 0x27c   : > { %v638_v33 = vpop.permute.xlu1 %637  ;;  %v635_v34 = vpop.permute.xlu0 %634  ;;  %1490 = vmatprep.mubr.msk.f32.mxu0 %vm816_vm0, %v683_v32 }
 0x27d   : > { %vm669_vm7 = vcmp.eq.s32.totalorder %v635_v34, %v1936_v20  ;;  %vm670_vm8 = vcmp.eq.s32.totalorder %v638_v33, %v1936_v20 }
 0x27e   : > { %v685_v36 = vsel %vm669_vm7, 1.0, %v1691_v23  ;;  %v686_v39 = vsel %vm670_vm8, 1.0, %v1691_v23 }
 0x27f   : > { %1491 = vmatmul.mubr.msk.f32.gmra.mxu0 %vm816_vm0, %v684_v35 }
 0x280   : > { %v644_v37 = vpop.permute.xlu1 %643  ;;  %v641_v38 = vpop.permute.xlu0 %640  ;;  %1493 = vmatprep.mubr.msk.f32.mxu0 %vm816_vm0, %v685_v36 }
 0x281   : > { %vm671_vm9 = vcmp.eq.s32.totalorder %v641_v38, %v1936_v20  ;;  %vm672_vm10 = vcmp.eq.s32.totalorder %v644_v37, %v1936_v20 }
 0x282   : > { %v687_v40 = vsel %vm671_vm9, 1.0, %v1691_v23  ;;  %v688_v43 = vsel %vm672_vm10, 1.0, %v1691_v23 }
 0x283   : > { %1494 = vmatmul.mubr.msk.f32.gmra.mxu0 %vm816_vm0, %v686_v39 }
 0x284   : > { %v650_v41 = vpop.permute.xlu1 %649  ;;  %v647_v42 = vpop.permute.xlu0 %646  ;;  %1496 = vmatprep.mubr.msk.f32.mxu0 %vm816_vm0, %v687_v40 }
 0x285   : > { %vm673_vm11 = vcmp.eq.s32.totalorder %v647_v42, %v1936_v20  ;;  %vm674_vm12 = vcmp.eq.s32.totalorder %v650_v41, %v1936_v20 }
 0x286   : > { %v689_v44 = vsel %vm673_vm11, 1.0, %v1691_v23  ;;  %v690_v47 = vsel %vm674_vm12, 1.0, %v1691_v23 }
 0x287   : > { %1497 = vmatmul.mubr.msk.f32.gmra.mxu0 %vm816_vm0, %v688_v43 }
 0x288   : > { %v656_v45 = vpop.permute.xlu1 %655  ;;  %v653_v46 = vpop.permute.xlu0 %652  ;;  %1499 = vmatprep.mubr.msk.f32.mxu0 %vm816_vm0, %v689_v44 }
 0x289   : > { %vm675_vm13 = vcmp.eq.s32.totalorder %v653_v46, %v1936_v20  ;;  %vm676_vm14 = vcmp.eq.s32.totalorder %v656_v45, %v1936_v20 }
 0x28a   : > { %v691_v48 = vsel %vm675_vm13, 1.0, %v1691_v23  ;;  %v692_v51 = vsel %vm676_vm14, 1.0, %v1691_v23 }
 0x28b   : > { %1500 = vmatmul.mubr.msk.f32.gmra.mxu0 %vm816_vm0, %v690_v47 }
 0x28c   : > { %v662_v49 = vpop.permute.xlu1 %661  ;;  %v659_v50 = vpop.permute.xlu0 %658  ;;  %1502 = vmatprep.mubr.msk.f32.mxu0 %vm816_vm0, %v691_v48 }
 0x28d   : > { %vm677_vm15 = vcmp.eq.s32.totalorder %v659_v50, %v1936_v20  ;;  %vm678_vm1 = vcmp.eq.s32.totalorder %v662_v49, %v1936_v20 }
 0x28e   : > { %v693_v52 = vsel %vm677_vm15, 1.0, %v1691_v23  ;;  %v694_v53 = vsel %vm678_vm1, 1.0, %v1691_v23 }
 0x28f   : > { %1503 = vmatmul.mubr.msk.f32.gmra.mxu0 %vm816_vm0, %v692_v51 }
 0x290   : > { %1505 = vmatprep.mubr.msk.f32.mxu0 %vm816_vm0, %v693_v52  ;;  %v792_v61 = vpop.permute.xlu0 %791  ;;  %v787_v63 = vpop.permute.xlu1 %786 }
 0x291   : > { %v815_v17 = vmul.f32 %v1999_v12, %v792_v61  ;;  %v814_v21 = vmul.f32 %v1999_v12, %v787_v63 }
 0x293   : > { %1506 = vmatmul.mubr.msk.f32.gmra.mxu0 %vm816_vm0, %v694_v53  ;;  %vm1026_vm0 = vcmp.eq.s32.totalorder %v1936_v20, 127 }
 0x294   : > { %v782_v2 = vpop.permute.xlu0 %781  ;;  %v777_v4 = vpop.permute.xlu1 %776 }
 0x295   : > { %v813_v18 = vmul.f32 %v1999_v12, %v782_v2  ;;  %v812_v22 = vmul.f32 %v1999_v12, %v777_v4 }
 0x298   : > { %v772_v7 = vpop.permute.xlu0 %771  ;;  %v767_v9 = vpop.permute.xlu1 %766 }
 0x299   : > { %v811_v27 = vmul.f32 %v1999_v12, %v772_v7  ;;  %v810_v31 = vmul.f32 %v1999_v12, %v767_v9 }
 0x29c   : > { %v762_v13 = vpop.permute.xlu0 %761  ;;  %v757_v15 = vpop.permute.xlu1 %756 }
 0x29d   : > { %v809_v37 = vmul.f32 %v1999_v12, %v762_v13  ;;  %v808_v42 = vmul.f32 %v1999_v12, %v757_v15 }
 0x2a0   : > { %v752_v25 = vpop.permute.xlu0 %751  ;;  %v747_v32 = vpop.permute.xlu1 %746 }
 0x2a1   : > { %v807_v47 = vmul.f32 %v1999_v12, %v752_v25  ;;  %v806_v51 = vmul.f32 %v1999_v12, %v747_v32  ;;  %v1693_v32 = vmov 127  }
 0x2a2   : > { %1598 = vset.pattern.permute.xlu1 %v1693_v32  ;;  %1597 = vset.pattern.permute.xlu0 %v1693_v32 }
 0x2a4   : > { %v742_v41 = vpop.permute.xlu0 %741  ;;  %v737_v46 = vpop.permute.xlu1 %736 }
 0x2a5   : > { %v805_v63 = vmul.f32 %v1999_v12, %v742_v41 }
 0x2a8   : > { %v732_v61 = vpop.permute.xlu0 %731  ;;  %v727_v7 = vpop.permute.xlu1 %726 }
 0x2ac   : > { %v722_v15 = vpop.permute.xlu0 %721 }
 0x337   : > { %v1982_v58 = vpop.f32.mrf.mxu0 }
 0x339   : > { %v1984_v59 = vpop.f32.mrf.mxu0 }
 0x33b   : > { %v1986_v60 = vpop.f32.mrf.mxu0 }
 0x33d   : > { %v1988_v62 = vpop.f32.mrf.mxu0 }
 0x33f   : > { %v1990_v0 = vpop.f32.mrf.mxu0 }
 0x341   : > { %v1992_v1 = vpop.f32.mrf.mxu0 }
 0x343   : > { %v1495_v3 = vpop.f32.mrf.mxu0 }
 0x344   : > { %v967_v52 = vadd.f32 %v1495_v3, %v807_v47  ;;  %v957_v3 = vadd.f32 %v1990_v0, %v805_v63 }
 0x345   : > { %v961_v5 = vpop.f32.mrf.mxu0 }
 0x346   : > { %v962_v2 = vadd.f32 %v961_v5, %v806_v51  ;;  %v1017_v9 = vmax.f32 %v967_v52, 0.0 }
 0x347   : > { %v1498_v6 = vpop.f32.mrf.mxu0 }
 0x348   : > { %v977_v43 = vadd.f32 %v1498_v6, %v809_v37  ;;  %v1016_v13 = vmax.f32 %v962_v2, 0.0 }
 0x349   : > { %v971_v8 = vpop.f32.mrf.mxu0 }
 0x34a   : > { %v972_v48 = vadd.f32 %v971_v8, %v808_v42  ;;  %v1019_v53 = vmax.f32 %v977_v43, 0.0  ;;  %v804_v8 = vmul.f32 %v1999_v12, %v737_v46 }
 0x34b   : > { %v1501_v10 = vpop.f32.mrf.mxu0 }
 0x34c   : > { %v987_v33 = vadd.f32 %v1501_v10, %v811_v27  ;;  %v1018_v4 = vmax.f32 %v972_v48, 0.0  ;;  %v1036_v10 = vsel %vm1026_vm0, 1.0, %v1019_v53  ;;  %v952_v5 = vadd.f32 %v1992_v1, %v804_v8 }
 0x34d   : > { %v981_v11 = vpop.f32.mrf.mxu0  ;;  %v801_v1 = vmul.f32 %v1999_v12, %v722_v15 }
 0x34e   : > { %v982_v38 = vadd.f32 %v981_v11, %v810_v31  ;;  %v1021_v44 = vmax.f32 %v987_v33, 0.0  ;;  %v803_v11 = vmul.f32 %v1999_v12, %v732_v61  ;;  %v1056_v33 = vld [vmem:[#allocation3] sm:$0xff] }
 0x34f   : > { %v1504_v14 = vpop.f32.mrf.mxu0 }
 0x350   : > { %v997_v23 = vadd.f32 %v1504_v14, %v813_v18  ;;  %v1020_v49 = vmax.f32 %v982_v38, 0.0  ;;  %v1038_v54 = vsel %vm1026_vm0, 1.0, %v1021_v44  ;;  %v1035_v14 = vsel %vm1026_vm0, 1.0, %v1018_v4 }
 0x351   : > { %v991_v16 = vpop.f32.mrf.mxu0  ;;  %v947_v0 = vadd.f32 %v1986_v60, %v803_v11  ;;  %v1034_v18 = vsel %vm1026_vm0, 1.0, %v1017_v9  ;;  %v937_v60 = vadd.f32 %v1982_v58, %v801_v1 }
 0x352   : > { %v992_v28 = vadd.f32 %v991_v16, %v812_v22  ;;  %v1023_v34 = vmax.f32 %v997_v23, 0.0  ;;  %v1037_v6 = vsel %vm1026_vm0, 1.0, %v1020_v49  ;;  %v802_v16 = vmul.f32 %v1999_v12, %v727_v7 }
 0x353   : > { %v1507_v19 = vpop.f32.mrf.mxu0  ;;  %v1014_v22 = vmax.f32 %v952_v5, 0.0  ;;  %v1033_v23 = vsel %vm1026_vm0, 1.0, %v1016_v13  ;;  %v1013_v25 = vmax.f32 %v947_v0, 0.0 }
 0x354   : > { %v1007_v24 = vadd.f32 %v1507_v19, %v815_v17  ;;  %v1022_v39 = vmax.f32 %v992_v28, 0.0  ;;  %v1040_v45 = vsel %vm1026_vm0, 1.0, %v1023_v34  ;;  %v1015_v17 = vmax.f32 %v957_v3, 0.0  ;;  %v717_v19 = vpop.permute.xlu1 %716 }
 0x355   : > { %v1001_v26 = vpop.f32.mrf.mxu0 }
 0x356   : > { %v1025_v29 = vmax.f32 %v1007_v24, 0.0  ;;  %v1002_v30 = vadd.f32 %v1001_v26, %v814_v21  ;;  %v1039_v50 = vsel %vm1026_vm0, 1.0, %v1022_v39  ;;  %v942_v21 = vadd.f32 %v1988_v62, %v802_v16 }
 0x357   : > { %v800_v24 = vmul.f32 %v1999_v12, %v717_v19  ;;  %v1032_v26 = vsel %vm1026_vm0, 1.0, %v1015_v17  ;;  %v1031_v62 = vsel %vm1026_vm0, 1.0, %v1014_v22  ;;  %v1030_v12 = vsel %vm1026_vm0, 1.0, %v1013_v25 }
 0x358   : > { %v1024_v35 = vmax.f32 %v1002_v30, 0.0  ;;  %v1042_v36 = vsel %vm1026_vm0, 1.0, %v1025_v29  ;;  %v1012_v28 = vmax.f32 %v942_v21, 0.0  ;;  %v1011_v29 = vmax.f32 %v937_v60, 0.0 }
 0x359   : > { %1508 = vmatprep.subr.mxu1 %v1042_v36  ;;  %v932_v27 = vadd.f32 %v1984_v59, %v800_v24 }
 0x35a   : > { %1509 = vmatpush3.msra.mxu1 %v1042_v36  ;;  %v1041_v40 = vsel %vm1026_vm0, 1.0, %v1024_v35  ;;  %v1029_v30 = vsel %vm1026_vm0, 1.0, %v1012_v28  ;;  %v1028_v59 = vsel %vm1026_vm0, 1.0, %v1011_v29  ;;  %v1055_v35 = vld [vmem:[#allocation3 + $0x8] sm:$0xff] }
 0x35b   : > { %1510 = vmatprep.subr.mxu1 %v1041_v40  ;;  %v1010_v58 = vmax.f32 %v932_v27, 0.0 }
 0x35c   : > { %1511 = vmatpush3.msra.mxu1 %v1041_v40 }
 0x35d   : > { %1512 = vmatprep.subr.mxu1 %v1040_v45  ;;  %v1027_v31 = vsel %vm1026_vm0, 1.0, %v1010_v58 }
 0x35e   : > { %1513 = vmatpush3.msra.mxu1 %v1040_v45 }
 0x35f   : > { %1514 = vmatprep.subr.mxu1 %v1039_v50 }
 0x360   : > { %1515 = vmatpush3.msra.mxu1 %v1039_v50 }
 0x361   : > { %1516 = vmatprep.subr.mxu1 %v1038_v54 }
 0x362   : > { %1517 = vmatpush3.msra.mxu1 %v1038_v54 }
 0x363   : > { %1518 = vmatprep.subr.mxu1 %v1037_v6 }
 0x364   : > { %1519 = vmatpush3.msra.mxu1 %v1037_v6 }
 0x365   : > { %1520 = vmatprep.subr.mxu1 %v1036_v10 }
 0x366   : > { %1521 = vmatpush3.msra.mxu1 %v1036_v10 }
 0x367   : > { %1522 = vmatprep.subr.mxu1 %v1035_v14 }
 0x368   : > { %1523 = vmatpush3.msra.mxu1 %v1035_v14 }
 0x369   : > { %1524 = vmatprep.subr.mxu1 %v1034_v18 }
 0x36a   : > { %1525 = vmatpush3.msra.mxu1 %v1034_v18 }
 0x36b   : > { %1526 = vmatprep.subr.mxu1 %v1033_v23 }
 0x36c   : > { %1527 = vmatpush3.msra.mxu1 %v1033_v23 }
 0x36d   : > { %1528 = vmatprep.subr.mxu1 %v1032_v26 }
 0x36e   : > { %1529 = vmatpush3.msra.mxu1 %v1032_v26 }
 0x36f   : > { %1530 = vmatprep.subr.mxu1 %v1031_v62 }
 0x370   : > { %1531 = vmatpush3.msra.mxu1 %v1031_v62 }
 0x371   : > { %1532 = vmatprep.subr.mxu1 %v1030_v12 }
 0x372   : > { %1533 = vmatpush3.msra.mxu1 %v1030_v12 }
 0x373   : > { %1534 = vmatprep.subr.mxu1 %v1029_v30 }
 0x374   : > { %1535 = vmatpush3.msra.mxu1 %v1029_v30 }
 0x375   : > { %1536 = vmatprep.subr.mxu1 %v1028_v59 }
 0x376   : > { %1537 = vmatpush3.msra.mxu1 %v1028_v59 }
 0x377   : > { %1538 = vmatprep.subr.mxu1 %v1027_v31 }
 0x378   : > { %1539 = vmatpush3.msra.mxu1 %v1027_v31 }
 0x379   : > { %1541 = vmatmul.mubr.msk.f32.vlgmr.msra.gmra.mxu1 %vm1052_vm3, %v1692_v57 }
 0x439   : > { %v1542_v34 = vpop.f32.mrf.mxu1 }
 0x43a   : > { %v1133_v36 = vadd.f32 %v1542_v34, %v1056_v33 }
 0x43b   : > { %v1123_v37 = vpop.f32.mrf.mxu1 }
 0x43c   : > { %v1132_v38 = vadd.f32 %v1123_v37, %v1055_v35  ;;  %v1142_v39 = vmax.f32 %v1133_v36, 1.0 }
 0x43e   : > { %1599 = vrcp.f32 %v1142_v39  ;;  %v1141_v20 = vmax.f32 %v1132_v38, 1.0 }
 0x440   : > { %1601 = vrcp.f32 %v1141_v20 }
 0x44b   : > { %v1600_v40 = vpop.eup %1599 }
 0x44c   : > { %1152 = vperm.xlu1 %1598, %v1600_v40  }
 0x44d   : > { %v1602_v41 = vpop.eup %1601 }
 0x44e   : > { %1147 = vperm.xlu0 %1597, %v1602_v41  }
 0x4c7   : > { %v1153_v42 = vpop.permute.xlu1 %1152 }
 0x4c8   : > { %v1156_v55 = vmul.f32 %v1153_v42, %v1133_v36 }
 0x4c9   : > { %v1148_v56 = vpop.permute.xlu0 %1147 }
 0x4ca   : > { %v1158_v57 = vmax.f32 %v1156_v55, 0.0  ;;  %v1155_v43 = vmul.f32 %v1148_v56, %v1132_v38  ;;  %1162 = sbr.rel (!%p488_p3) target bundleno = 1239 (0x4d7), region = 68 }
 0x4cc   : > { %1160 = vst [vmem:[#allocation3] sm:$0xff] %v1158_v57  ;;  %v1157_v44 = vmax.f32 %v1155_v43, 0.0 }
 0x4ce   : > { %1159 = vst [vmem:[#allocation3 + $0x8] sm:$0xff] %v1157_v44 }
 0x4d3   : > { %v1164_v46 = vld [vmem:[#allocation3] sm:$0xff] }
 0x4d4   : > { %1166 = vst [vmem:[#allocation7 + $0x8] sm:$0xff] %v1164_v46 }
 0x4d5   : > { %v1163_v45 = vld [vmem:[#allocation3 + $0x8] sm:$0xff] }
 0x4d6   : > { %1165 = vst [vmem:[#allocation7] sm:$0xff] %v1163_v45 }
 0x4d7 PF: > { %p2064_p4 = scmp.eq.s32.totalorder %s1296_s27, 1  ;;  %s1694_s19 = smov [#allocation7]  }
 0x4d8   : > { %s1173_s12 = sshll.u32 %s1694_s19, 4  ;;  %s1174_s12 = int_to_ptr.vmem [resolvable:$true] %s1173_s12 }
 0x4d9   : > { %s1629_s13 = scalar_lea.vmem %s1174_s12, 256  ;;  %p1636_p8 = scmp.lt.s32.totalorder %s1174_s12, %s1174_s12 }
 0x4da   : > { %p1630_p5 = scmp.ne.s32.totalorder %s1174_s12, %s1629_s13  ;;  %p1637_p9 = scmp.lt.s32.totalorder %s1629_s13, %s1629_s13 }
 0x4dc   : > { %p1631_p6 = pnand %p1630_p5, %p2064_p4  ;;  %p1638_p10 = por %p1637_p9, %p1636_p8 }
 0x4de   : > { %p1632_p7 = pneg %p1631_p6 }
 0x4e0   : > { %p1639_p11 = pnand %p1638_p10, %p1632_p7 }
 0x4e2   : > { %1642 = shalt.err (!%p1639_p11)
}
 0x4e3   : > { %s1695_s24 = smov 128   ;;  %s1696_s27 = smov 8  }
 0x4e4   : > { %1548 = dma.vmem_to_hbm [thread:$0]  (%p2064_p4), %s1174_s12, 256, %s2095_s7, [#allocation6], %s1695_s24, %s1695_s24, %s1696_s27  }
 0x4e5   : > { %1670 = dma.done.wait (%p2064_p4), [#allocation6], 256  }
 0x4e6   : > { %1672 = vsyncadd (%p2064_p4), [#allocation6], 4294967040 }
 0x4e7 PF: > { %s19_s26 = sadd.s32 1, %s1683_s26   ;;  %s2099_s24 = smov %s1679_s25 }
 0x4e8   : > { %p16_p12 = scmp.ge.s32.totalorder %s19_s26, 4   ;;  %s2100_s25 = smov %s2102_s28 }
 0x4ea   :  { %18 = sbr.rel (!%p16_p12) target bundleno = 3 (0x3), region = 111 }
 0x4ef   :  { %1189 = vsyncpa [#allocation5], 1 }
 0x4f0   :  { %1191 = vsyncpa [#allocation5 + $0x1], 1 }
 0x4f1   :  { %1192 = vsyncpa [#allocation6], 1 }
 0x4f2   :  { %1194 = vsyncpa [#allocation6 + $0x1], 1 }

</bundles_post_ra>
